<compile_context>
chip_gen: v5e
topology: v5e:2x2
jax: 0.10.0
libtpu: 0.0.40
codegen_flags: <defaults>
</compile_context>

<pallas_src>
import functools

import jax
import jax.numpy as jnp
from jax.experimental import pallas as pl
from jax.experimental.pallas import tpu as pltpu


def _round_down(x, m):
    return (x // m) * m


def _sublane_align(dtype):
    # Rows per sublane-packed vreg tile: 8 (4B), 16 (2B), 32 (1B).
    return {4: 8, 2: 16, 1: 32}.get(jnp.dtype(dtype).itemsize, 8)


def _vmem_capacity_bytes():
    """Per-core VMEM capacity; conservative 64 MiB (v7x) fallback if unknown."""
    try:
        cap = getattr(pltpu.get_tpu_info(), "vmem_capacity_bytes", None)
        if cap:
            return int(cap)
    except Exception:
        pass
    return 64 * 1024 * 1024


def _choose_tiles(C, E, V, x_dtype, w_dtype, o_dtype, budget, tile_m, tile_v, tile_e):
    """Pick (tm, te, tv, k_tiles, tile_bytes) that fit `budget` bytes of VMEM tiles."""
    xb = jnp.dtype(x_dtype).itemsize
    wb = jnp.dtype(w_dtype).itemsize
    ob = jnp.dtype(o_dtype).itemsize
    align_m = _sublane_align(x_dtype)

    # -- tm: a tile of n_ctx rows (second-to-last dim of the x / out blocks).
    pref_m = 256 if tile_m is None else tile_m
    if C <= pref_m:
        tm = C                                   # full dim is always a legal extent
    else:
        tm = max(_round_down(pref_m, align_m), align_m)

    def tiles_fit(te_, tv_, with_acc):
        need = 2 * (tm * te_ * xb + te_ * tv_ * wb + tm * tv_ * ob)
        if with_acc:
            need += tm * tv_ * 4
        return need <= budget

    # -- te: contraction tile.  Prefer the full E (K_tiles == 1) so the weight
    # vocab strip is DMA'd exactly once per (s, v) instead of once per M tile.
    min_tv = V if V <= 128 else 128
    if tile_e is not None and tile_e < E and E % tile_e == 0 and tile_e % 128 == 0:
        te = tile_e
    elif tiles_fit(E, min_tv, with_acc=False):
        te = E
    else:
        te = E
        cand = _round_down(E, 128)
        while cand >= 128:
            if E % cand == 0 and tiles_fit(cand, min_tv, with_acc=True):
                te = cand
                break
            cand -= 128
    k_tiles = E // te if E % te == 0 else 1
    if E % te != 0:                              # contraction tile must divide E
        te, k_tiles = E, 1

    # -- tv: vocab tile, lane-dense (multiple of 128) unless V is tiny.
    pref_v = (4096 if k_tiles == 1 else 1024) if tile_v is None else tile_v
    per_col = 2 * (te * wb + tm * ob) + (0 if k_tiles == 1 else tm * 4)
    avail = budget - 2 * tm * te * xb
    tv_cap = max(avail // max(per_col, 1), 128)
    tv = max(_round_down(min(pref_v, tv_cap), 128), 128)
    if V <= tv:
        tv = V                                   # full dim: legal even if not 128-aligned

    tile_bytes = 2 * (tm * te * xb + te * tv * wb + tm * tv * ob)
    if k_tiles > 1:
        tile_bytes += tm * tv * 4
    return tm, te, tv, k_tiles, tile_bytes


def _unembed_kernel_fused(x_ref, w_ref, o_ref):
    # x_ref: (1, 1, tm, E)   w_ref: (1, E, tv)   o_ref: (1, 1, tm, tv)
    o_ref[0, 0] = jnp.dot(
        x_ref[0, 0], w_ref[0], preferred_element_type=jnp.float32
    ).astype(o_ref.dtype)


def _unembed_kernel_acc(x_ref, w_ref, o_ref, acc_ref):
    # Fallback when E is tiled: x_ref (1,1,tm,te), w_ref (1,te,tv), acc (tm,tv) f32.
    k = pl.program_id(4)

    @pl.when(k == 0)
    def _():
        acc_ref[...] = jnp.zeros_like(acc_ref)

    acc_ref[...] += jnp.dot(x_ref[0, 0], w_ref[0], preferred_element_type=jnp.float32)

    @pl.when(k == pl.num_programs(4) - 1)
    def _():
        o_ref[0, 0] = acc_ref[...].astype(o_ref.dtype)


@functools.partial(
    jax.jit, static_argnames=("tile_m", "tile_v", "tile_e", "compute_dtype")
)
def unembed_group(x, w_u, *, tile_m=None, tile_v=None, tile_e=None, compute_dtype=None):
    """out[b,s,c,v] = sum_e x[b,s,c,e] * w_u[s,e,v]; x:(B,S,C,E), w_u:(S,E,V)."""
    B, S, C, E = x.shape
    Sw, Ew, V = w_u.shape
    assert S == Sw and E == Ew

    out_dtype = x.dtype
    if compute_dtype is not None:
        # NOTE: prefer keeping W_U resident in bf16 upstream; this per-call cast
        # re-reads + re-writes the whole weight in HBM before the kernel runs.
        x = x.astype(compute_dtype)
        w_u = w_u.astype(compute_dtype)

    vmem_cap = _vmem_capacity_bytes()
    budget = max(vmem_cap - (16 << 20), 24 << 20)   # leave headroom for internal scratch
    tm, te, tv, k_tiles, tile_bytes = _choose_tiles(
        C, E, V, x.dtype, w_u.dtype, out_dtype, budget, tile_m, tile_v, tile_e)

    c_tiles = pl.cdiv(C, tm)
    v_tiles = pl.cdiv(V, tv)
    vmem_limit = int(min(vmem_cap, max(tile_bytes + (16 << 20), 48 << 20)))

    cost = pl.CostEstimate(
        flops=2 * B * S * C * E * V,
        transcendentals=0,
        bytes_accessed=(x.size * jnp.dtype(x.dtype).itemsize
                        + w_u.size * jnp.dtype(w_u.dtype).itemsize
                        + B * S * C * V * jnp.dtype(out_dtype).itemsize),
    )

    if k_tiles == 1:
        # Preferred path: full-E contraction, no accumulator, all axes parallel.
        # Weight block index is constant across the inner (B, C_tiles) sweep ->
        # each W_U vocab strip is fetched from HBM exactly once.
        grid = (S, v_tiles, B, c_tiles)
        in_specs = [
            pl.BlockSpec((1, 1, tm, E), lambda s, v, b, c: (b, s, c, 0)),
            pl.BlockSpec((1, E, tv), lambda s, v, b, c: (s, 0, v)),
        ]
        out_spec = pl.BlockSpec((1, 1, tm, tv), lambda s, v, b, c: (b, s, c, v))
        scratch = []
        kernel = _unembed_kernel_fused
        dims = ("parallel", "parallel", "parallel", "parallel")
    else:
        # Fallback for very large d_embed: K innermost + f32 accumulator.
        grid = (S, v_tiles, B, c_tiles, k_tiles)
        in_specs = [
            pl.BlockSpec((1, 1, tm, te), lambda s, v, b, c, k: (b, s, c, k)),
            pl.BlockSpec((1, te, tv), lambda s, v, b, c, k: (s, k, v)),
        ]
        out_spec = pl.BlockSpec((1, 1, tm, tv), lambda s, v, b, c, k: (b, s, c, v))
        scratch = [pltpu.VMEM((tm, tv), jnp.float32)]
        kernel = _unembed_kernel_acc
        dims = ("parallel", "parallel", "parallel", "parallel", "arbitrary")

    return pl.pallas_call(
        kernel,
        out_shape=jax.ShapeDtypeStruct((B, S, C, V), out_dtype),
        grid_spec=pltpu.PrefetchScalarGridSpec(
            num_scalar_prefetch=0,
            grid=grid,
            in_specs=in_specs,
            out_specs=out_spec,
            scratch_shapes=scratch,
        ),
        compiler_params=pltpu.CompilerParams(
            dimension_semantics=dims,
            vmem_limit_bytes=vmem_limit,
        ),
        cost_estimate=cost,
    )(x, w_u)


if __name__ == "__main__":
    # Small config consistent with TransformerConfig / UnembedGroup.
    batch = 2
    sample_count = 2
    n_ctx = 8
    d_embed = 32
    n_vocab = 16
    weight_alpha = 0.5

    key = jax.random.PRNGKey(0)
    kx, kw, kx2, kw2 = jax.random.split(key, 4)

    # Parameter init mirroring: W_U = alpha * randn(S, E, V) / sqrt(V)
    w_u = (weight_alpha
           * jax.random.normal(kw, (sample_count, d_embed, n_vocab), jnp.float32)
           / jnp.sqrt(jnp.float32(n_vocab)))
    x = jax.random.normal(kx, (batch, sample_count, n_ctx, d_embed), jnp.float32)

    ref = jnp.einsum('bsce,sev->bscv', x, w_u)

    # f32 path (exact forward semantics of the PyTorch module), fused K=1 kernel.
    out = jax.block_until_ready(unembed_group(x, w_u))
    assert out.shape == (batch, sample_count, n_ctx, n_vocab)
    assert out.dtype == x.dtype
    assert jnp.allclose(out, ref, atol=1e-5, rtol=1e-5)

    # bf16-compute / f32-accumulate path (production weights should live in bf16).
    out_bf16 = jax.block_until_ready(unembed_group(x, w_u, compute_dtype=jnp.bfloat16))
    assert jnp.allclose(out_bf16, ref, atol=5e-2, rtol=5e-2)

    # Exercise the K-tiled accumulator fallback path (tile_e < E).
    x2 = jax.random.normal(kx2, (1, 1, 8, 256), jnp.float32)
    w2 = jax.random.normal(kw2, (1, 256, 128), jnp.float32)
    ref2 = jnp.einsum('bsce,sev->bscv', x2, w2)
    out2 = jax.block_until_ready(unembed_group(x2, w2, tile_e=128))
    assert jnp.allclose(out2, ref2, atol=1e-3, rtol=1e-4)

    print("KERNEL_OK")
</pallas_src>

<mosaic_0001>
module attributes {stable_mosaic.version = 11 : i64} {
  func.func @_unembed_kernel_fused(%arg0: i32, %arg1: i32, %arg2: i32, %arg3: i32, %arg4: memref<1x1x8x32xf32, #tpu.memory_space<vmem>>, %arg5: memref<1x32x16xf32, #tpu.memory_space<vmem>>, %arg6: memref<1x1x8x16xf32, #tpu.memory_space<vmem>>) attributes {dimension_semantics = [#tpu.dimension_semantics<parallel>, #tpu.dimension_semantics<parallel>, #tpu.dimension_semantics<parallel>, #tpu.dimension_semantics<parallel>], iteration_bounds = array<i64: 2, 1, 2, 1>, scalar_prefetch = 0 : i64, scratch_operands = 0 : i64, tpu.core_type = #tpu.core_type<tc>, window_params = [{transform_indices = @transform_0, window_bounds = array<i64: 1, 1, 8, 32>}, {transform_indices = @transform_1, window_bounds = array<i64: 1, 32, 16>}, {transform_indices = @transform_2, window_bounds = array<i64: 1, 1, 8, 16>}]} {
    %c0 = arith.constant 0 : index
    %c0_0 = arith.constant 0 : index
    %c0_1 = arith.constant 0 : index
    %c0_2 = arith.constant 0 : index
    %0 = vector.load %arg4[%c0, %c0_0, %c0_1, %c0_2] : memref<1x1x8x32xf32, #tpu.memory_space<vmem>>, vector<1x1x8x32xf32>
    %1 = vector.shape_cast %0 : vector<1x1x8x32xf32> to vector<8x32xf32>
    %c0_3 = arith.constant 0 : index
    %c0_4 = arith.constant 0 : index
    %c0_5 = arith.constant 0 : index
    %2 = vector.load %arg5[%c0_3, %c0_4, %c0_5] : memref<1x32x16xf32, #tpu.memory_space<vmem>>, vector<1x32x16xf32>
    %3 = vector.shape_cast %2 : vector<1x32x16xf32> to vector<32x16xf32>
    %cst = arith.constant dense<0.000000e+00> : vector<8x16xf32>
    %4 = tpu.matmul %1, %3, %cst {dimension_numbers = #tpu.dot_dimension_numbers<[1], [0], [0], [1], [0, 0, 1, 1], [], []>} : vector<8x32xf32>, vector<32x16xf32>, vector<8x16xf32> -> vector<8x16xf32>
    %c0_6 = arith.constant 0 : index
    %c0_7 = arith.constant 0 : index
    %c0_8 = arith.constant 0 : index
    %c0_9 = arith.constant 0 : index
    %5 = vector.load %arg6[%c0_6, %c0_7, %c0_8, %c0_9] : memref<1x1x8x16xf32, #tpu.memory_space<vmem>>, vector<1x1x8x16xf32>
    %6 = vector.shape_cast %5 : vector<1x1x8x16xf32> to vector<8x16xf32>
    %7 = vector.shape_cast %4 : vector<8x16xf32> to vector<1x1x8x16xf32>
    tpu.vector_store %arg6[%c0_6, %c0_7, %c0_8, %c0_9], %7 {strides = array<i32>} : memref<1x1x8x16xf32, #tpu.memory_space<vmem>>, vector<1x1x8x16xf32>,
    return
  }
  func.func @transform_0(%arg0: i32, %arg1: i32, %arg2: i32, %arg3: i32) -> (i32, i32, i32, i32) {
    %c0_i32 = arith.constant 0 : i32
    %c0_i32_0 = arith.constant 0 : i32
    return %arg2, %arg0, %arg3, %c0_i32 : i32, i32, i32, i32
  }
  func.func @transform_1(%arg0: i32, %arg1: i32, %arg2: i32, %arg3: i32) -> (i32, i32, i32) {
    %c0_i32 = arith.constant 0 : i32
    %c0_i32_0 = arith.constant 0 : i32
    return %arg0, %c0_i32, %arg1 : i32, i32, i32
  }
  func.func @transform_2(%arg0: i32, %arg1: i32, %arg2: i32, %arg3: i32) -> (i32, i32, i32, i32) {
    %c0_i32 = arith.constant 0 : i32
    return %arg2, %arg0, %arg3, %arg1 : i32, i32, i32, i32
  }
}

</mosaic_0001>

<bundles_post_ra>
// kernel: unembed_group.1
= control target key start
LH: loop header
LB: loop body
LE: loop exit
PB: predicated region body
PF: predicated region fallthrough
CT: control target
= control target key end

     0   :  { %7 = vsyncpa [#allocation3], 0  ;;  %s709_s0 = inlined_call_operand.vmem [shape: f32[2,2,8,32], index: 0, kind: input, shape index: {}]   ;;  %s710_s1 = inlined_call_operand.vmem [shape: f32[2,32,16], index: 1, kind: input, shape index: {}]   ;;  %s711_s2 = inlined_call_operand.hbm [shape: f32[2,2,8,16], index: 2, kind: output, shape index: {}]  }
   0x1   :  { %9 = vsyncpa [#allocation3 + $0x1], 0  ;;  %s584_s9 = smov 0   ;;  %s586_s10 = smov 0  }
   0x2   :  { %s588_s11 = smov 0   ;;  %s590_s12 = smov 0  }
   0x3   :  { %s592_s13 = smov 0   ;;  %s594_s14 = smov 0  }
   0x4   :  { %s596_s15 = smov 0   ;;  %s598_s16 = smov 0  }
   0x5 LB: > { %s385_s17 = sadd.s32 4294967295, %s567_s16   ;;  %s386_s18 = sadd.s32 4294967294, %s567_s16   ;;  %s567_s16 = sphi %s598_s16, %s15_s16   ;;  %s563_s15 = sphi %s596_s15, %s720_s15   ;;  %s559_s14 = sphi %s594_s14, %s719_s14   ;;  %s555_s13 = sphi %s592_s13, %s718_s13   ;;  %s551_s12 = sphi %s590_s12, %s717_s12   ;;  %s547_s11 = sphi %s588_s11, %s716_s11   ;;  %s543_s10 = sphi %s586_s10, %s715_s10   ;;  %s539_s9 = sphi %s584_s9, %s714_s9  }
   0x6   : > { %s33_s19 = sadd.s32 1, %s559_s14  ;;  %s41_s20 = sadd.s32 1, %s563_s15 }
   0x7   : > { %p35_p0 = scmp.ge.s32.totalorder %s33_s19, 2  ;;  %p122_p1 = scmp.ne.s32.totalorder %s547_s11, %s543_s10 }
   0x8   : > { %p123_p2 = scmp.eq.s32.totalorder %s385_s17, 3  ;;  %p128_p5 = scmp.ne.s32.totalorder %s543_s10, %s539_s9 }
   0x9   : > { %s722_s19 = smov (%p35_p0, %s33_s19), 0  ;;  %s724_s20 = smov (!%p35_p0, %s41_s20), %s563_s15 }
   0xa   : > { %s103_s21 = ssub.s32 %s559_s14, %s722_s19  ;;  %p635_p3 = por %p123_p2, %p122_p1 }
   0xb   : > { %p43_p4 = scmp.ge.s32.totalorder %s724_s20, 2  ;;  %p129_p6 = scmp.eq.s32.totalorder %s386_s18, 3 }
   0xc   : > { %p389_p7 = scmp.ge.s32.totalorder %s567_s16, 1  ;;  %p172_p9 = scmp.lt.s32.totalorder %s567_s16, 5 }
   0xd   : > { %s726_s20 = smov (%p43_p4, %s724_s20), 0  ;;  %p644_p8 = por %p129_p6, %p128_p5 }
   0xe   : > { %s104_s24 = ssub.s32 %s563_s15, %s726_s20  ;;  %s112_s25 = sadd.s32 1, %s547_s11 }
   0xf   : > { %s105_s26 = sor.u32 %s104_s24, %s103_s21  ;;  %p173_p10 = pnand %p389_p7, %p172_p9 }
  0x10   : > { %p110_p11 = scmp.eq.s32.totalorder %s105_s26, 0  ;;  %p210_p12 = scmp.lt.s32.totalorder (!%p173_p10), %s555_s13, 1 }
  0x11   : > { %176 = sbr.rel (%p173_p10) target bundleno = 163 (0xa3), region = 28  ;;  %p208_p13 = scmp.lt.s32.totalorder (!%p173_p10), %s551_s12, 1 }
  0x12   : > { %s653_s27 = scalar_select %p110_p11, %s547_s11, %s112_s25  }
  0x13   : > { %s397_s24 = sshll.u32 (!%p173_p10), %s551_s12, 1  ;;  %s205_s25 = sand.u32 (!%p173_p10), 1, %s543_s10  }
  0x14   : > { %s271_s26 = sadd.s32 (!%p173_p10), %s555_s13, %s397_s24 }
  0x16   : > { %s211_s28 = scalar_select %p210_p12, %s555_s13, 1  ;;  %vm232_vm0 = vcmask 261120   ;;  %vm256_vm1 = vcmask 130048  }
  0x17   : > { %s209_s29 = scalar_select %p208_p13, %s551_s12, 1 }
  0x18   : > { %s401_s30 = sshll.u32 %s211_s28, 5 }
  0x19   : > { %s226_s5 = scalar_lea.vmem %s710_s1, %s401_s30  ;;  %s391_s6 = sshll.u32 %s209_s29, 1 }
  0x1a   : > { %v231_v0 = vld [vmem:[%s226_s5 + $0x18] sm:$0xff]  ;;  %v230_v1 = vld [vmem:[%s226_s5 + $0x10] sm:$0xff]  ;;  %s216_s7 = sadd.s32 %s391_s6, %s211_s28  ;;  %v229_v2 = vld [vmem:[%s226_s5 + $0x8] sm:$0xff]  ;;  %s390_s29 = sshll.u32 %s205_s25, 3 }
  0x1b   : > { %248 = vmatpush.msra.mxu0 %v231_v0  ;;  %s392_s8 = sshll.u32 %s216_s7, 3  ;;  %v228_v3 = vld [vmem:[%s226_s5] sm:$0xff]  ;;  %s398_s28 = sshll.u32 %s271_s26, 3 }
  0x1c   : > { %s218_s21 = scalar_lea.vmem %s709_s0, %s392_s8  ;;  %s273_s4 = scalar_lea.hbm %s711_s2, %s398_s28 }
  0x1d   : > { %249 = vmatpush.msra.mxu0 %v230_v1  ;;  %v227_v4 = vld [vmem:[%s218_s21] sm:$0xff]  ;;  %s207_s6 = scalar_lea.vmem [#allocation2], %s390_s29  ;;  %s277_s8 = sshll.u32 %s273_s4, 4  ;;  %s278_s8 = int_to_ptr.hbm [resolvable:$true] %s277_s8 }
  0x1e   : > { %s275_s7 = sshll.u32 %s207_s6, 4  ;;  %s259_s5 = scalar_lea.sflag [#allocation3], %s205_s25  ;;  %s276_s7 = int_to_ptr.vmem [resolvable:$true] %s275_s7 }
  0x1f   : > { %250 = vmatpush.msra.mxu0 %v229_v2  ;;  %s487_s17 = sshra.s32 %s278_s8, 4  ;;  %s493_s21 = scalar_lea.hbm %s711_s2, 32  ;;  %s488_s17 = int_to_ptr.hbm [resolvable:$true] %s487_s17 }
  0x20   : > { %s489_s12 = scalar_lea.hbm %s488_s17, 8  ;;  %p494_p4 = scmp.lt.s32.totalorder %s488_s17, %s711_s2 }
  0x21   : > { %251 = vmatpush.msra.mxu0 %v228_v3  ;;  %p490_p0 = scmp.ne.s32.totalorder %s488_s17, %s489_s12  ;;  %p495_p5 = scmp.lt.s32.totalorder %s493_s21, %s489_s12 }
  0x22   : > { %395 = vmatmul.msk.f32.vlgmr.msra.gmra.mxu0 %vm232_vm0, %v227_v4 }
  0x23   : > { %p491_p1 = pnand %p490_p0, %p635_p3  ;;  %p496_p6 = por %p495_p5, %p494_p4 }
  0x25   : > { %p492_p2 = pneg %p491_p1 }
  0x27   : > { %p497_p7 = pnand %p496_p6, %p492_p2 }
  0x9f   : > { %v253_v5 = vpop.f32.mrf.mxu0 }
  0xa0   : > { %257 = vst.msk [vmem:[%s207_s6] sm:$0xff] %vm256_vm1, %v253_v5 }
  0xa1   : > { %500 = shalt.err (!%p497_p7)
}
  0xa2   : > { %402 = dma.vmem_to_hbm [thread:$0]  (%p635_p3), %s276_s7, 128, %s278_s8, %s259_s5  }
  0xa3 PF: > { %p408_p9 = scmp.ge.s32.totalorder %s567_s16, 2  ;;  %s289_s25 = sand.u32 1, %s539_s9  }
  0xa4   : > { %s290_s29 = scalar_lea.sflag [#allocation3], %s289_s25 }
  0xa5   : > { %p405_p10 = pnand %p408_p9, %p644_p8 }
  0xa7   : > { %p406_p11 = pneg %p405_p10 }
  0xa9   : > { %534 = dma.done.wait (%p406_p11), %s290_s29, 128  }
  0xaa   : > { %536 = vsyncadd (%p406_p11), %s290_s29, 4294967168  ;;  %s15_s16 = sadd.s32 1, %s567_s16   ;;  %s714_s9 = smov %s543_s10 }
  0xab   : > { %p12_p12 = scmp.ge.s32.totalorder %s15_s16, 6   ;;  %s715_s10 = smov %s547_s11 }
  0xac   : > { %s716_s11 = smov %s653_s27  ;;  %s717_s12 = smov %s559_s14 }
  0xad   : > { %s718_s13 = smov %s563_s15  ;;  %s719_s14 = smov %s722_s19 }
  0xae   : > { %s720_s15 = smov %s726_s20  ;;  %14 = sbr.rel (!%p12_p12) target bundleno = 5 (0x5), region = 66 }
  0xb3   :  { %296 = vsyncpa [#allocation3], 1 }
  0xb4   :  { %298 = vsyncpa [#allocation3 + $0x1], 1 }

</bundles_post_ra>
